<compile_context>
chip_gen: v5e
topology: v5e:2x2
jax: 0.10.0
libtpu: 0.0.40
codegen_flags: <defaults>
</compile_context>

<pallas_src>
import functools

import jax
import jax.numpy as jnp
import numpy as np
from jax.experimental import pallas as pl
from jax.experimental.pallas import tpu as pltpu


# ---------------------------------------------------------------------------
# Helpers
# ---------------------------------------------------------------------------
def _round_up(v, m):
    return -(-v // m) * m


def _round_down(v, m):
    return (v // m) * m


def _pad_rows(nrows, itemsize):
    """Rows as laid out in VMEM: sublanes round up to 32 bytes / itemsize."""
    return _round_up(max(nrows, 1), max(8, 32 // max(itemsize, 1)))


def _vmem_capacity_bytes():
    try:
        return int(pltpu.get_tpu_info().vmem_capacity_bytes)
    except Exception:
        return 64 * 1024 * 1024  # conservative fallback (v7x per-core VMEM)


def _lane_partial(v):
    """(..., L) -> (..., 128) per-lane partial sums.

    When L is a multiple of 128, tree-reduce over 128-lane chunks: pure VALU
    adds on vregs already loaded for the elementwise work (no XLU, short dep
    chain). Otherwise (single full-extent tile < 128 lanes) reduce into lane 0.
    """
    L = v.shape[-1]
    if L % 128 == 0:
        chunks = [v[..., j * 128:(j + 1) * 128] for j in range(L // 128)]
        while len(chunks) > 1:
            nxt = [chunks[a] + chunks[a + 1] for a in range(0, len(chunks) - 1, 2)]
            if len(chunks) % 2:
                nxt.append(chunks[-1])
            chunks = nxt
        return chunks[0]
    ssum = jnp.sum(v, axis=-1, keepdims=True)
    lane = jax.lax.broadcasted_iota(jnp.int32, v.shape[:-1] + (128,), v.ndim - 1)
    return jnp.where(lane == 0, ssum, 0.0)


def _budgets(cap, vmem_budget_bytes):
    budget = int(cap * 0.40) if vmem_budget_bytes is None else int(vmem_budget_bytes)
    return max(min(budget, int(cap * 0.45)), 1)


def _spatial_tiling(s, max_by_budget):
    """Pick a lane tile: multiple of 128 (ragged last tile masked in-kernel),
    or the full extent when s < 128. Block dims never exceed array dims."""
    if s % 128 == 0:
        max_tile = s
    elif s > 128:
        max_tile = _round_down(s, 128)
    else:
        return s, 1, s                       # full-extent single tile
    tile = max(128, min(max_by_budget, max_tile, 16384))
    n_tiles = -(-s // tile)
    rem = s - (n_tiles - 1) * tile
    return tile, n_tiles, rem


# ---------------------------------------------------------------------------
# Kernels
# ---------------------------------------------------------------------------
def _dense_sums_kernel(x_ref, y_ref, tp_ref, sxy_ref, *, n_tiles, rem, tile):
    """Dense one-hot target. Grid = (row blocks [parallel], spatial tiles [arbitrary]).
    tp_ref / sxy_ref: (bcb, 128) f32 lane-dense accumulators (output-resident)."""
    k = pl.program_id(1)

    @pl.when(k == 0)
    def _():
        tp_ref[...] = jnp.zeros_like(tp_ref)
        sxy_ref[...] = jnp.zeros_like(sxy_ref)

    x = x_ref[...].astype(jnp.float32)
    y = y_ref[...].astype(jnp.float32)

    def accum(xv, yv):
        tp_ref[...] += _lane_partial(xv * yv)
        sxy_ref[...] += _lane_partial(xv + yv)

    if rem == tile:                       # every tile full: no masking, no guards
        accum(x, y)
    else:
        @pl.when(k < n_tiles - 1)
        def _():
            accum(x, y)

        @pl.when(k == n_tiles - 1)        # ragged last tile: mask stale lanes
        def _():
            lane = jax.lax.broadcasted_iota(jnp.int32, x.shape, x.ndim - 1)
            keep = lane < rem
            accum(jnp.where(keep, x, 0.0), jnp.where(keep, y, 0.0))


def _label_sums_kernel(x_ref, lab_ref, tp_ref, sxy_ref, *, n_tiles, rem, tile):
    """Integer-label target. x block (1, C, tile); labels block (1, 1, tile).
    One-hot is built in-kernel (labels == channel iota) -> no dense y stream."""
    k = pl.program_id(1)

    @pl.when(k == 0)
    def _():
        tp_ref[...] = jnp.zeros_like(tp_ref)
        sxy_ref[...] = jnp.zeros_like(sxy_ref)

    x = x_ref[...].astype(jnp.float32)                       # (1, C, tile)
    lab = jnp.broadcast_to(lab_ref[...], x.shape)            # (1, C, tile) int32
    cls = jax.lax.broadcasted_iota(jnp.int32, x.shape, 1)    # channel index
    y = (lab == cls).astype(jnp.float32)

    def accum(xv, yv):
        tp_ref[...] += _lane_partial(xv * yv)
        sxy_ref[...] += _lane_partial(xv + yv)

    if rem == tile:
        accum(x, y)
    else:
        @pl.when(k < n_tiles - 1)
        def _():
            accum(x, y)

        @pl.when(k == n_tiles - 1)
        def _():
            lane = jax.lax.broadcasted_iota(jnp.int32, x.shape, 2)
            keep = lane < rem
            accum(jnp.where(keep, x, 0.0), jnp.where(keep, y, 0.0))


# ---------------------------------------------------------------------------
# pallas_call drivers
# ---------------------------------------------------------------------------
def _dice_sums_dense(x2d, y2d, *, vmem_budget_bytes=None):
    """Per-row tp = sum(x*y) and sxy = sum(x+y). x2d, y2d: (rows, S)."""
    rows, s = x2d.shape
    isz_x, isz_y = x2d.dtype.itemsize, y2d.dtype.itemsize
    cap = _vmem_capacity_bytes()
    budget = _budgets(cap, vmem_budget_bytes)

    def per_lane(nrows):      # double-buffered input bytes per lane of tile
        return 2 * (_pad_rows(nrows, isz_x) * isz_x + _pad_rows(nrows, isz_y) * isz_y)

    s_pad = _round_up(s, 128)
    lane_target = min(s_pad, 512)

    # Row blocking: keep the lane tile >= ~512 within the budget for large rows.
    if budget // per_lane(rows) >= lane_target:
        bcb = rows
    else:
        bcb = min(rows, max(8, _round_down(
            budget // (2 * lane_target * (isz_x + isz_y)), 8)))
    if rows >= 16:            # >=2 row blocks -> "parallel" axis feeds both v7x TCs
        bcb = min(bcb, _round_up(-(-rows // 2), 8))

    tile, n_tiles, rem = _spatial_tiling(s, _round_down(budget // per_lane(bcb), 128))
    n_row_blocks = -(-rows // bcb)

    out_sds = jax.ShapeDtypeStruct((rows, 128), jnp.float32)
    in_spec = pl.BlockSpec((bcb, tile), lambda i, k: (i, k))
    out_spec = pl.BlockSpec((bcb, 128), lambda i, k: (i, 0))

    footprint = tile * per_lane(bcb) + 4 * _pad_rows(bcb, 4) * 128 * 4
    vmem_limit = int(min(max(footprint + (4 << 20), 16 << 20), int(cap * 0.9)))

    kernel = functools.partial(_dense_sums_kernel, n_tiles=n_tiles, rem=rem, tile=tile)

    tp, sxy = pl.pallas_call(
        kernel,
        out_shape=(out_sds, out_sds),
        grid_spec=pltpu.PrefetchScalarGridSpec(
            num_scalar_prefetch=0,
            grid=(n_row_blocks, n_tiles),
            in_specs=[in_spec, in_spec],
            out_specs=(out_spec, out_spec),
        ),
        compiler_params=pltpu.CompilerParams(
            dimension_semantics=("parallel", "arbitrary"),
            vmem_limit_bytes=vmem_limit),
    )(x2d, y2d)

    return tp.sum(axis=-1), sxy.sum(axis=-1)


def _dice_sums_label(x3, lab3, *, vmem_budget_bytes=None):
    """tp / sxy per (b, c) from predictions x3 (B, C, S) and labels lab3 (B, 1, S)."""
    bsz, c, s = x3.shape
    isz_x, isz_l = x3.dtype.itemsize, lab3.dtype.itemsize
    cap = _vmem_capacity_bytes()
    budget = _budgets(cap, vmem_budget_bytes)

    per_lane = 2 * (_pad_rows(c, isz_x) * isz_x + _pad_rows(1, isz_l) * isz_l)
    tile, n_tiles, rem = _spatial_tiling(s, _round_down(budget // per_lane, 128))

    out_sds = jax.ShapeDtypeStruct((bsz, c, 128), jnp.float32)
    x_spec = pl.BlockSpec((1, c, tile), lambda b, k: (b, 0, k))
    lab_spec = pl.BlockSpec((1, 1, tile), lambda b, k: (b, 0, k))
    out_spec = pl.BlockSpec((1, c, 128), lambda b, k: (b, 0, 0))

    footprint = tile * per_lane + 4 * _pad_rows(c, 4) * 128 * 4
    vmem_limit = int(min(max(footprint + (4 << 20), 16 << 20), int(cap * 0.9)))

    kernel = functools.partial(_label_sums_kernel, n_tiles=n_tiles, rem=rem, tile=tile)

    tp, sxy = pl.pallas_call(
        kernel,
        out_shape=(out_sds, out_sds),
        grid_spec=pltpu.PrefetchScalarGridSpec(
            num_scalar_prefetch=0,
            grid=(bsz, n_tiles),
            in_specs=[x_spec, lab_spec],
            out_specs=(out_spec, out_spec),
        ),
        compiler_params=pltpu.CompilerParams(
            dimension_semantics=("parallel", "arbitrary"),
            vmem_limit_bytes=vmem_limit),
    )(x3, lab3)

    return tp.sum(axis=-1), sxy.sum(axis=-1)


# ---------------------------------------------------------------------------
# Public wrapper (SoftDiceLoss.forward equivalent)
# ---------------------------------------------------------------------------
@functools.partial(
    jax.jit,
    static_argnames=("batch_dice", "do_bg", "smooth", "vmem_budget_bytes"))
def soft_dice_loss(x, y, *, batch_dice=False, do_bg=True, smooth=1.0,
                   vmem_budget_bytes=None):
    """x: (B, C, *spatial) predictions. y: dense one-hot with y.shape == x.shape,
    OR integer class labels of shape (B, *spatial) / (B, 1, *spatial)."""
    # TODO(synk): loss_mask and apply_nonlin (both default None in the module)
    # are not implemented.
    b, c = int(x.shape[0]), int(x.shape[1])
    s = int(np.prod(x.shape[2:]))

    if tuple(y.shape) == tuple(x.shape):
        # Dense one-hot target: stream both arrays at their native dtype.
        x2d = x.reshape(b * c, s)
        y2d = y.reshape(b * c, s)
        rows, sp, fold = b * c, s, 1
        if rows < 8:                       # fold spatial into rows (free reshape)
            k = 1
            while rows * k < 8:
                k *= 2
            if sp % k == 0:
                fold, rows, sp = k, rows * k, sp // k
                x2d = x2d.reshape(rows, sp)
                y2d = y2d.reshape(rows, sp)
        tp, sxy = _dice_sums_dense(x2d, y2d, vmem_budget_bytes=vmem_budget_bytes)
        if fold > 1:
            tp = tp.reshape(-1, fold).sum(-1)
            sxy = sxy.reshape(-1, fold).sum(-1)
        tp = tp.reshape(b, c)
        sxy = sxy.reshape(b, c)
    else:
        # Integer-label target: one-hot built in-kernel (no dense y HBM stream).
        lab3 = y.reshape(b, 1, s).astype(jnp.int32)
        x3 = x.reshape(b, c, s)
        tp, sxy = _dice_sums_label(x3, lab3, vmem_budget_bytes=vmem_budget_bytes)

    if batch_dice:
        tp, sxy = tp.sum(0), sxy.sum(0)

    # fp = sum(x) - tp, fn = sum(y) - tp  =>  2*tp + fp + fn = sum(x + y) = sxy
    nominator = 2.0 * tp + smooth
    denominator = sxy + smooth
    dc = nominator / (denominator + 1e-8)

    if not do_bg:
        dc = dc[1:] if batch_dice else dc[:, 1:]
    return -dc.mean()


# ---------------------------------------------------------------------------
# Validation
# ---------------------------------------------------------------------------
def _reference(x, y_onehot, smooth=1.0):
    x = x.astype(jnp.float32)
    y = y_onehot.astype(jnp.float32)
    axes = tuple(range(2, x.ndim))
    tp = jnp.sum(x * y, axis=axes)
    fp = jnp.sum(x * (1 - y), axis=axes)
    fn = jnp.sum((1 - x) * y, axis=axes)
    dc = (2 * tp + smooth) / (2 * tp + fp + fn + smooth + 1e-8)
    return -dc.mean()


if __name__ == "__main__":
    key = jax.random.PRNGKey(0)
    k1, k2, k3, k4, k5, k6, k7, k8 = jax.random.split(key, 8)

    # Case 1: dense one-hot target, f32, single full tile.
    B, C, H, W = 2, 4, 16, 16
    x1 = jax.random.uniform(k1, (B, C, H, W), dtype=jnp.float32)
    lab1 = jax.random.randint(k2, (B, H, W), 0, C)
    y1 = jax.nn.one_hot(lab1, C, dtype=jnp.float32).transpose(0, 3, 1, 2)
    out1 = soft_dice_loss(x1, y1)
    jax.block_until_ready(out1)
    ref1 = _reference(x1, y1)
    assert np.allclose(np.asarray(out1), np.asarray(ref1), rtol=1e-5, atol=1e-5), (
        float(out1), float(ref1))

    # Case 2: dense path, bf16 one-hot target, ragged spatial extent; tiny
    # budget forces the multi-tile + masked-last-tile paths.
    B2, C2, H2, W2 = 2, 4, 10, 45
    x2 = jax.random.uniform(k3, (B2, C2, H2, W2), dtype=jnp.float32)
    lab2 = jax.random.randint(k4, (B2, H2, W2), 0, C2)
    y2 = jax.nn.one_hot(lab2, C2, dtype=jnp.bfloat16).transpose(0, 3, 1, 2)
    out2 = soft_dice_loss(x2, y2, vmem_budget_bytes=6 * 1024)
    jax.block_until_ready(out2)
    ref2 = _reference(x2, y2)
    assert np.allclose(np.asarray(out2), np.asarray(ref2), rtol=1e-5, atol=1e-5), (
        float(out2), float(ref2))

    # Case 3: integer-label target (in-kernel one-hot, no dense y stream),
    # bf16 predictions, 3-D volume, ragged tiles.
    B3, C3, D3, H3, W3 = 2, 3, 4, 6, 7
    x3 = jax.random.uniform(k5, (B3, C3, D3, H3, W3), dtype=jnp.bfloat16)
    lab3 = jax.random.randint(k6, (B3, D3, H3, W3), 0, C3)
    out3 = soft_dice_loss(x3, lab3)
    jax.block_until_ready(out3)
    y3 = jnp.moveaxis(jax.nn.one_hot(lab3, C3, dtype=jnp.float32), -1, 1)
    ref3 = _reference(x3, y3)
    assert np.allclose(np.asarray(out3), np.asarray(ref3), rtol=1e-5, atol=1e-5), (
        float(out3), float(ref3))

    # Case 4: tiny B*C (=4) exercises the sublane-folding path.
    B4, C4, H4, W4 = 1, 4, 8, 8
    x4 = jax.random.uniform(k7, (B4, C4, H4, W4), dtype=jnp.float32)
    lab4 = jax.random.randint(k8, (B4, H4, W4), 0, C4)
    y4 = jax.nn.one_hot(lab4, C4, dtype=jnp.float32).transpose(0, 3, 1, 2)
    out4 = soft_dice_loss(x4, y4)
    jax.block_until_ready(out4)
    ref4 = _reference(x4, y4)
    assert np.allclose(np.asarray(out4), np.asarray(ref4), rtol=1e-5, atol=1e-5), (
        float(out4), float(ref4))

    print("KERNEL_OK")
</pallas_src>

<mosaic_0001>
module attributes {stable_mosaic.version = 11 : i64} {
  func.func @_dense_sums_kernel(%arg0: i32, %arg1: i32, %arg2: memref<8x256xf32, #tpu.memory_space<vmem>>, %arg3: memref<8x256xf32, #tpu.memory_space<vmem>>, %arg4: memref<8x128xf32, #tpu.memory_space<vmem>>, %arg5: memref<8x128xf32, #tpu.memory_space<vmem>>) attributes {dimension_semantics = [#tpu.dimension_semantics<parallel>, #tpu.dimension_semantics<arbitrary>], iteration_bounds = array<i64: 1, 1>, scalar_prefetch = 0 : i64, scratch_operands = 0 : i64, tpu.core_type = #tpu.core_type<tc>, window_params = [{transform_indices = @transform_0, window_bounds = array<i64: 8, 256>}, {transform_indices = @transform_1, window_bounds = array<i64: 8, 256>}, {transform_indices = @transform_2, window_bounds = array<i64: 8, 128>}, {transform_indices = @transform_3, window_bounds = array<i64: 8, 128>}]} {
    %c0_i32 = arith.constant 0 : i32
    %0 = arith.cmpi eq, %arg1, %c0_i32 : i32
    %1 = arith.extui %0 : i1 to i32
    %c0_i32_0 = arith.constant 0 : i32
    %2 = arith.cmpi ne, %1, %c0_i32_0 : i32
    scf.if %2 {
      %cst = arith.constant 0.000000e+00 : f32
      %19 = vector.broadcast %cst : f32 to vector<8x128xf32>
      %c0_12 = arith.constant 0 : index
      %c0_13 = arith.constant 0 : index
      %20 = vector.load %arg4[%c0_12, %c0_13] : memref<8x128xf32, #tpu.memory_space<vmem>>, vector<8x128xf32>
      tpu.vector_store %arg4[%c0_12, %c0_13], %19 {strides = array<i32>} : memref<8x128xf32, #tpu.memory_space<vmem>>, vector<8x128xf32>,
      %cst_14 = arith.constant 0.000000e+00 : f32
      %21 = vector.broadcast %cst_14 : f32 to vector<8x128xf32>
      %c0_15 = arith.constant 0 : index
      %c0_16 = arith.constant 0 : index
      %22 = vector.load %arg5[%c0_15, %c0_16] : memref<8x128xf32, #tpu.memory_space<vmem>>, vector<8x128xf32>
      tpu.vector_store %arg5[%c0_15, %c0_16], %21 {strides = array<i32>} : memref<8x128xf32, #tpu.memory_space<vmem>>, vector<8x128xf32>,
    } else {
    }
    %c0 = arith.constant 0 : index
    %c0_1 = arith.constant 0 : index
    %3 = vector.load %arg2[%c0, %c0_1] : memref<8x256xf32, #tpu.memory_space<vmem>>, vector<8x256xf32>
    %c0_2 = arith.constant 0 : index
    %c0_3 = arith.constant 0 : index
    %4 = vector.load %arg3[%c0_2, %c0_3] : memref<8x256xf32, #tpu.memory_space<vmem>>, vector<8x256xf32>
    %c0_4 = arith.constant 0 : index
    %c0_5 = arith.constant 0 : index
    %5 = vector.load %arg4[%c0_4, %c0_5] : memref<8x128xf32, #tpu.memory_space<vmem>>, vector<8x128xf32>
    %6 = arith.mulf %3, %4 : vector<8x256xf32>
    %7 = vector.extract_strided_slice %6 {offsets = [0, 0], sizes = [8, 128], strides = [1, 1]} : vector<8x256xf32> to vector<8x128xf32>
    %8 = vector.extract_strided_slice %6 {offsets = [0, 128], sizes = [8, 128], strides = [1, 1]} : vector<8x256xf32> to vector<8x128xf32>
    %9 = arith.addf %7, %8 : vector<8x128xf32>
    %10 = arith.addf %5, %9 : vector<8x128xf32>
    %c0_6 = arith.constant 0 : index
    %c0_7 = arith.constant 0 : index
    %11 = vector.load %arg4[%c0_6, %c0_7] : memref<8x128xf32, #tpu.memory_space<vmem>>, vector<8x128xf32>
    tpu.vector_store %arg4[%c0_6, %c0_7], %10 {strides = array<i32>} : memref<8x128xf32, #tpu.memory_space<vmem>>, vector<8x128xf32>,
    %c0_8 = arith.constant 0 : index
    %c0_9 = arith.constant 0 : index
    %12 = vector.load %arg5[%c0_8, %c0_9] : memref<8x128xf32, #tpu.memory_space<vmem>>, vector<8x128xf32>
    %13 = arith.addf %3, %4 : vector<8x256xf32>
    %14 = vector.extract_strided_slice %13 {offsets = [0, 0], sizes = [8, 128], strides = [1, 1]} : vector<8x256xf32> to vector<8x128xf32>
    %15 = vector.extract_strided_slice %13 {offsets = [0, 128], sizes = [8, 128], strides = [1, 1]} : vector<8x256xf32> to vector<8x128xf32>
    %16 = arith.addf %14, %15 : vector<8x128xf32>
    %17 = arith.addf %12, %16 : vector<8x128xf32>
    %c0_10 = arith.constant 0 : index
    %c0_11 = arith.constant 0 : index
    %18 = vector.load %arg5[%c0_10, %c0_11] : memref<8x128xf32, #tpu.memory_space<vmem>>, vector<8x128xf32>
    tpu.vector_store %arg5[%c0_10, %c0_11], %17 {strides = array<i32>} : memref<8x128xf32, #tpu.memory_space<vmem>>, vector<8x128xf32>,
    return
  }
  func.func @transform_0(%arg0: i32, %arg1: i32) -> (i32, i32) {
    %c0_i32 = arith.constant 0 : i32
    return %arg0, %arg1 : i32, i32
  }
  func.func @transform_1(%arg0: i32, %arg1: i32) -> (i32, i32) {
    %c0_i32 = arith.constant 0 : i32
    return %arg0, %arg1 : i32, i32
  }
  func.func @transform_2(%arg0: i32, %arg1: i32) -> (i32, i32) {
    %c0_i32 = arith.constant 0 : i32
    %c0_i32_0 = arith.constant 0 : i32
    return %arg0, %c0_i32 : i32, i32
  }
  func.func @transform_3(%arg0: i32, %arg1: i32) -> (i32, i32) {
    %c0_i32 = arith.constant 0 : i32
    %c0_i32_0 = arith.constant 0 : i32
    return %arg0, %c0_i32 : i32, i32
  }
}

</mosaic_0001>

<bundles_post_ra>
// kernel: soft_dice_loss.1
= control target key start
LH: loop header
LB: loop body
LE: loop exit
PB: predicated region body
PF: predicated region fallthrough
CT: control target
= control target key end

     0   :  { %s82_s0 = inlined_call_operand.vmem [shape: f32[8,256], index: 0, kind: input, shape index: {}]   ;;  %s83_s1 = inlined_call_operand.vmem [shape: f32[8,256], index: 1, kind: input, shape index: {}]   ;;  %s84_s2 = inlined_call_operand.vmem [shape: f32[8,128], index: 2, kind: output, shape index: {0}]   ;;  %s85_s3 = inlined_call_operand.vmem [shape: f32[8,128], index: 3, kind: output, shape index: {1}]  }
   0x1   :  { %v19_v0 = vld [vmem:[%s82_s0] sm:$0xff]  ;;  %v20_v1 = vld [vmem:[%s82_s0 + $0x8] sm:$0xff] }
   0x2   :  { %v21_v2 = vld [vmem:[%s83_s1] sm:$0xff]  ;;  %v22_v3 = vld [vmem:[%s83_s1 + $0x8] sm:$0xff] }
   0x3   :  { %v24_v4 = vmul.f32 %v21_v2, %v19_v0  ;;  %v30_v5 = vadd.f32 %v21_v2, %v19_v0  ;;  %v25_v6 = vmul.f32 %v22_v3, %v20_v1  ;;  %v31_v7 = vadd.f32 %v22_v3, %v20_v1 }
   0x5   :  { %v26_v8 = vadd.f32 %v25_v6, %v24_v4  ;;  %v32_v9 = vadd.f32 %v31_v7, %v30_v5 }
   0x7   :  { %28 = vst [vmem:[%s84_s2] sm:$0xff] %v26_v8 }
   0x8   :  { %34 = vst [vmem:[%s85_s3] sm:$0xff] %v32_v9 }

</bundles_post_ra>
